<compile_context>
chip_gen: v7x
topology: tpu7x:2x2x1
jax: 0.10.0
libtpu: 0.0.40
codegen_flags: <defaults>
</compile_context>

<pallas_src>
import functools

import jax
import jax.numpy as jnp
from jax import lax
from jax.experimental import pallas as pl
from jax.experimental.pallas import tpu as pltpu

_MIB = 2 ** 20


def _round_up(x, m):
    return ((x + m - 1) // m) * m


def _gelu_exact(h):
    # torch.nn.GELU() default (approximate='none'): 0.5*x*(1+erf(x/sqrt(2))).
    # Kept exact (f32) to preserve the module's forward semantics; tanh-approx would move
    # this work to the EUP slot if the model ever tolerates it.
    return 0.5 * h * (1.0 + lax.erf(h * jnp.float32(0.7071067811865476)))


def _ffn_kernel_scratch(x_ref, w1_ref, b1_ref, w2_ref, b2_ref, o_ref, acc_ref):
    """Grid = (M tiles, hidden chunks).  Separate f32 accumulator (non-f32 outputs)."""
    k = pl.program_id(1)

    @pl.when(k == 0)
    def _():
        # Seed the accumulator with b2 so the finalize is just a cast.
        acc_ref[...] = jnp.broadcast_to(b2_ref[...].astype(jnp.float32), acc_ref.shape)

    # Linear 1 on the MXU: native-dtype operands, f32 accumulation.
    h = jnp.dot(x_ref[...], w1_ref[...], preferred_element_type=jnp.float32)
    h = _gelu_exact(h + b1_ref[...].astype(jnp.float32))

    # Linear 2 (partial over this hidden chunk), accumulate in f32.
    acc_ref[...] += jnp.dot(
        h.astype(w2_ref.dtype), w2_ref[...], preferred_element_type=jnp.float32
    )

    @pl.when(k == pl.num_programs(1) - 1)
    def _():
        o_ref[...] = acc_ref[...].astype(o_ref.dtype)


def _ffn_kernel_inplace(x_ref, w1_ref, b1_ref, w2_ref, b2_ref, o_ref):
    """f32 activations: accumulate directly into the resident output block (no scratch)."""
    k = pl.program_id(1)

    @pl.when(k == 0)
    def _():
        o_ref[...] = jnp.broadcast_to(b2_ref[...].astype(o_ref.dtype), o_ref.shape)

    h = jnp.dot(x_ref[...], w1_ref[...], preferred_element_type=jnp.float32)
    h = _gelu_exact(h + b1_ref[...].astype(jnp.float32))
    o_ref[...] += jnp.dot(
        h.astype(w2_ref.dtype), w2_ref[...], preferred_element_type=jnp.float32
    )


def _vmem_budget_bytes():
    """(budget_bytes, big_vmem) — per-generation scoped-VMEM budget with headroom."""
    try:
        phys = int(pltpu.get_tpu_info().vmem_capacity_bytes)
    except Exception:
        phys = 128 * _MIB
    if phys >= 100 * _MIB:
        # v5e / v6e: 128 MiB physical -> use most of it.
        return min(phys - 24 * _MIB, 112 * _MIB), True
    # v7x-class: 64 MiB physical -> leave room for compiler scratch / semaphores.
    return max(phys - 12 * _MIB, 32 * _MIB), False


def _is_v5():
    try:
        return "v5" in jax.devices()[0].device_kind.lower()
    except Exception:
        return False


def _weight_spec(shape, index_map, deep_buffer):
    """BlockSpec for a streamed weight chunk; optionally 3-deep buffered (v5e)."""
    if deep_buffer and hasattr(pl, "Buffered"):
        try:
            return pl.BlockSpec(shape, index_map, pipeline_mode=pl.Buffered(3))
        except TypeError:
            pass
    return pl.BlockSpec(shape, index_map)


@functools.partial(jax.jit, static_argnames=("block_m", "block_h"))
def feed_forward(x, w1, b1, w2, b2, *, block_m=None, block_h=None):
    """x: (B, N, dim). w1: (dim, hidden), b1: (hidden,), w2: (hidden, dim), b2: (dim,)."""
    B, N, dim = x.shape
    hidden = w1.shape[1]
    M = B * N

    x_isz = jnp.dtype(x.dtype).itemsize
    w_isz = jnp.dtype(w1.dtype).itemsize
    out_is_f32 = jnp.dtype(x.dtype) == jnp.float32

    budget, big_vmem = _vmem_budget_bytes()
    deep_weight_buf = big_vmem and _is_v5()
    n_wbuf = 3 if deep_weight_buf else 2

    # Feature dim padded to full 256-wide MXU passes (v6e/v7x); also fine on v5e.
    dim_pad = _round_up(dim, 256)

    # ---- M tile ----------------------------------------------------------------------
    auto_m = block_m is None
    if auto_m:
        target = 1024 if big_vmem else 512
        if dim_pad > 2048:
            target //= 2
        if M >= 2 * target:
            block_m = target
            for cand in (target, target // 2):  # prefer a divisor of M: no M-padding copy
                if M % cand == 0:
                    block_m = cand
                    break
        else:
            # Split into >=2 tiles so both v7x TensorCores / megacore halves get work.
            block_m = max(128, _round_up((M + 1) // 2, 128))

    # ---- per-step VMEM footprint -------------------------------------------------------
    def vmem_est(bm, bh):
        est = 2 * bm * dim_pad * x_isz                    # x tiles (double-buffered)
        est += 2 * bm * dim_pad * x_isz                   # out tiles (double-buffered)
        est += n_wbuf * 2 * dim_pad * bh * w_isz          # W1/W2 chunks
        est += 2 * 8 * (bh + dim_pad) * 4                 # biases (sublane-padded)
        if not out_is_f32:
            est += bm * dim_pad * 4                       # f32 accumulator scratch
        est += bm * bh * (4 + w_isz)                      # GELU f32 intermediate + downcast
        return est

    # ---- hidden chunk ------------------------------------------------------------------
    if block_h is None:
        cap_h = 4096 if big_vmem else 2048
        while True:
            fixed = vmem_est(block_m, 0)
            per256 = max(1, vmem_est(block_m, 256) - fixed)
            avail = budget - fixed
            if avail < per256 and auto_m and block_m > 128:
                block_m = max(128, _round_up(block_m // 2, 128))  # shrink M tile, retry
                continue
            max_h = max(256, (avail // per256) * 256) if avail > 0 else 256
            cap = min(cap_h, max_h, _round_up(hidden, 256))
            # Choose the multiple of 256 (<= cap) minimizing hidden-padding waste; ties go
            # to the largest chunk (scan downward).
            block_h, best_waste = cap, None
            bh = cap
            while bh >= 256:
                waste = _round_up(hidden, bh) - hidden
                if best_waste is None or waste < best_waste:
                    block_h, best_waste = bh, waste
                bh -= 256
            break

    M_pad = _round_up(M, block_m)
    hidden_pad = _round_up(hidden, block_h)
    grid_m = M_pad // block_m
    grid_k = hidden_pad // block_h
    grid = (grid_m, grid_k)

    # ---- padding (skipped whenever shapes already line up) ------------------------------
    x2d = x.reshape(M, dim)
    if M_pad == M and dim_pad == dim:
        x_p = x2d
    else:
        x_p = jnp.pad(x2d, ((0, M_pad - M), (0, dim_pad - dim)))
    if dim_pad == dim and hidden_pad == hidden:
        w1_p, w2_p = w1, w2
    else:
        w1_p = jnp.pad(w1, ((0, dim_pad - dim), (0, hidden_pad - hidden)))
        w2_p = jnp.pad(w2, ((0, hidden_pad - hidden), (0, dim_pad - dim)))
    b1_p = (b1 if hidden_pad == hidden else jnp.pad(b1, (0, hidden_pad - hidden)))
    b1_p = b1_p.reshape(1, hidden_pad)
    b2_p = (b2 if dim_pad == dim else jnp.pad(b2, (0, dim_pad - dim))).reshape(1, dim_pad)

    # ---- scoped VMEM limit & cost estimate ----------------------------------------------
    est = vmem_est(block_m, block_h)
    vmem_limit = int(min(max(int(est * 1.25), 32 * _MIB), budget))

    cost = pl.CostEstimate(
        flops=4 * M_pad * dim_pad * hidden_pad,
        transcendentals=M_pad * hidden_pad,
        bytes_accessed=int(
            2 * M_pad * dim_pad * x_isz                      # x read + out write
            + grid_m * 2 * dim_pad * hidden_pad * w_isz      # weights re-streamed per M tile
            + (hidden_pad + dim_pad) * 4                     # biases
        ),
    )

    in_specs = [
        pl.BlockSpec((block_m, dim_pad), lambda i, k: (i, 0)),                     # x tile
        _weight_spec((dim_pad, block_h), lambda i, k: (0, k), deep_weight_buf),    # W1 chunk
        pl.BlockSpec((1, block_h), lambda i, k: (0, k)),                           # b1 chunk
        _weight_spec((block_h, dim_pad), lambda i, k: (k, 0), deep_weight_buf),    # W2 chunk
        pl.BlockSpec((1, dim_pad), lambda i, k: (0, 0)),                           # b2
    ]
    out_spec = pl.BlockSpec((block_m, dim_pad), lambda i, k: (i, 0))

    if out_is_f32:
        kernel = _ffn_kernel_inplace
        scratch = []
    else:
        kernel = _ffn_kernel_scratch
        scratch = [pltpu.VMEM((block_m, dim_pad), jnp.float32)]

    out_p = pl.pallas_call(
        kernel,
        out_shape=jax.ShapeDtypeStruct((M_pad, dim_pad), x.dtype),
        grid_spec=pltpu.PrefetchScalarGridSpec(
            num_scalar_prefetch=0,
            grid=grid,
            in_specs=in_specs,
            out_specs=out_spec,
            scratch_shapes=scratch,
        ),
        compiler_params=pltpu.CompilerParams(
            dimension_semantics=("parallel", "arbitrary"),
            vmem_limit_bytes=vmem_limit,
        ),
        cost_estimate=cost,
    )(x_p, w1_p, b1_p, w2_p, b2_p)

    out = out_p if (M_pad == M and dim_pad == dim) else out_p[:M, :dim]
    return out.reshape(B, N, dim)


def _reference(x2d, w1, b1, w2, b2):
    h = x2d @ w1 + b1
    h = 0.5 * h * (1.0 + lax.erf(h * 0.7071067811865476))
    return h @ w2 + b2


if __name__ == "__main__":
    # Small shapes consistent with the module: (B, N, dim) token-sequence MLP.
    B, N, dim, hidden_dim = 2, 8, 32, 64

    key = jax.random.PRNGKey(0)
    kx, kw1, kb1, kw2, kb2 = jax.random.split(key, 5)

    x = jax.random.normal(kx, (B, N, dim), dtype=jnp.float32)

    # Deterministic parameter init (uniform, like nn.Linear default bounds).
    bound1 = 1.0 / (dim ** 0.5)
    w1 = jax.random.uniform(kw1, (dim, hidden_dim), jnp.float32, -bound1, bound1)
    b1 = jax.random.uniform(kb1, (hidden_dim,), jnp.float32, -bound1, bound1)
    bound2 = 1.0 / (hidden_dim ** 0.5)
    w2 = jax.random.uniform(kw2, (hidden_dim, dim), jnp.float32, -bound2, bound2)
    b2 = jax.random.uniform(kb2, (dim,), jnp.float32, -bound2, bound2)

    # f32 path (accumulate-into-output kernel).
    out = feed_forward(x, w1, b1, w2, b2)
    out = jax.block_until_ready(out)

    ref = _reference(x.reshape(-1, dim), w1, b1, w2, b2).reshape(B, N, dim)
    assert out.shape == (B, N, dim)
    assert jnp.allclose(out, ref, atol=1e-5, rtol=1e-5), "f32 mismatch vs reference"

    # bf16 path (separate f32 accumulator scratch kernel).
    out_bf16 = feed_forward(
        x.astype(jnp.bfloat16),
        w1.astype(jnp.bfloat16), b1.astype(jnp.bfloat16),
        w2.astype(jnp.bfloat16), b2.astype(jnp.bfloat16),
    )
    out_bf16 = jax.block_until_ready(out_bf16)
    assert out_bf16.shape == (B, N, dim)
    assert jnp.allclose(out_bf16.astype(jnp.float32), ref, atol=1e-1, rtol=1e-1), \
        "bf16 mismatch vs reference"

    print("KERNEL_OK")
</pallas_src>

<mosaic_0001>
module attributes {stable_mosaic.version = 11 : i64} {
  func.func @_ffn_kernel_inplace(%arg0: i32, %arg1: i32, %arg2: memref<128x256xf32, #tpu.memory_space<vmem>>, %arg3: memref<256x256xf32, #tpu.memory_space<vmem>>, %arg4: memref<1x256xf32, #tpu.memory_space<vmem>>, %arg5: memref<256x256xf32, #tpu.memory_space<vmem>>, %arg6: memref<1x256xf32, #tpu.memory_space<vmem>>, %arg7: memref<128x256xf32, #tpu.memory_space<vmem>>) attributes {dimension_semantics = [#tpu.dimension_semantics<parallel>, #tpu.dimension_semantics<arbitrary>], iteration_bounds = array<i64: 1, 1>, scalar_prefetch = 0 : i64, scratch_operands = 0 : i64, tpu.core_type = #tpu.core_type<tc>, window_params = [{transform_indices = @transform_0, window_bounds = array<i64: 128, 256>}, {transform_indices = @transform_1, window_bounds = array<i64: 256, 256>}, {transform_indices = @transform_2, window_bounds = array<i64: 1, 256>}, {transform_indices = @transform_3, window_bounds = array<i64: 256, 256>}, {pipeline_mode = #tpu.pipeline_mode<synchronous>, transform_indices = @transform_4, window_bounds = array<i64: 1, 256>}, {transform_indices = @transform_5, window_bounds = array<i64: 128, 256>}]} {
    %c0_i32 = arith.constant 0 : i32
    %0 = arith.cmpi eq, %arg1, %c0_i32 : i32
    %1 = arith.extui %0 : i1 to i32
    %c0_i32_0 = arith.constant 0 : i32
    %2 = arith.cmpi ne, %1, %c0_i32_0 : i32
    scf.if %2 {
      %c0_16 = arith.constant 0 : index
      %c0_17 = arith.constant 0 : index
      %22 = vector.load %arg6[%c0_16, %c0_17] : memref<1x256xf32, #tpu.memory_space<vmem>>, vector<1x256xf32>
      %23 = vector.shape_cast %22 : vector<1x256xf32> to vector<1x256xf32>
      %24 = vector.broadcast %23 : vector<1x256xf32> to vector<128x256xf32>
      %c0_18 = arith.constant 0 : index
      %c0_19 = arith.constant 0 : index
      %25 = vector.load %arg7[%c0_18, %c0_19] : memref<128x256xf32, #tpu.memory_space<vmem>>, vector<128x256xf32>
      tpu.vector_store %arg7[%c0_18, %c0_19], %24 {strides = array<i32>} : memref<128x256xf32, #tpu.memory_space<vmem>>, vector<128x256xf32>,
    } else {
    }
    %c0 = arith.constant 0 : index
    %c0_1 = arith.constant 0 : index
    %3 = vector.load %arg2[%c0, %c0_1] : memref<128x256xf32, #tpu.memory_space<vmem>>, vector<128x256xf32>
    %c0_2 = arith.constant 0 : index
    %c0_3 = arith.constant 0 : index
    %4 = vector.load %arg3[%c0_2, %c0_3] : memref<256x256xf32, #tpu.memory_space<vmem>>, vector<256x256xf32>
    %cst = arith.constant dense<0.000000e+00> : vector<128x256xf32>
    %5 = tpu.matmul %3, %4, %cst {dimension_numbers = #tpu.dot_dimension_numbers<[1], [0], [0], [1], [0, 0, 1, 1], [], []>} : vector<128x256xf32>, vector<256x256xf32>, vector<128x256xf32> -> vector<128x256xf32>
    %c0_4 = arith.constant 0 : index
    %c0_5 = arith.constant 0 : index
    %6 = vector.load %arg4[%c0_4, %c0_5] : memref<1x256xf32, #tpu.memory_space<vmem>>, vector<1x256xf32>
    %7 = vector.broadcast %6 : vector<1x256xf32> to vector<128x256xf32>
    %8 = arith.addf %5, %7 : vector<128x256xf32>
    %cst_6 = arith.constant 5.000000e-01 : f32
    %9 = vector.broadcast %cst_6 : f32 to vector<128x256xf32>
    %10 = arith.mulf %9, %8 : vector<128x256xf32>
    %cst_7 = arith.constant 0.707106769 : f32
    %11 = vector.broadcast %cst_7 : f32 to vector<128x256xf32>
    %12 = arith.mulf %8, %11 : vector<128x256xf32>
    %13 = math.erf %12 : vector<128x256xf32>
    %cst_8 = arith.constant 1.000000e+00 : f32
    %14 = vector.broadcast %cst_8 : f32 to vector<128x256xf32>
    %15 = arith.addf %14, %13 : vector<128x256xf32>
    %16 = arith.mulf %10, %15 : vector<128x256xf32>
    %c0_9 = arith.constant 0 : index
    %c0_10 = arith.constant 0 : index
    %17 = vector.load %arg7[%c0_9, %c0_10] : memref<128x256xf32, #tpu.memory_space<vmem>>, vector<128x256xf32>
    %c0_11 = arith.constant 0 : index
    %c0_12 = arith.constant 0 : index
    %18 = vector.load %arg5[%c0_11, %c0_12] : memref<256x256xf32, #tpu.memory_space<vmem>>, vector<256x256xf32>
    %cst_13 = arith.constant dense<0.000000e+00> : vector<128x256xf32>
    %19 = tpu.matmul %16, %18, %cst_13 {dimension_numbers = #tpu.dot_dimension_numbers<[1], [0], [0], [1], [0, 0, 1, 1], [], []>} : vector<128x256xf32>, vector<256x256xf32>, vector<128x256xf32> -> vector<128x256xf32>
    %20 = arith.addf %17, %19 : vector<128x256xf32>
    %c0_14 = arith.constant 0 : index
    %c0_15 = arith.constant 0 : index
    %21 = vector.load %arg7[%c0_14, %c0_15] : memref<128x256xf32, #tpu.memory_space<vmem>>, vector<128x256xf32>
    tpu.vector_store %arg7[%c0_14, %c0_15], %20 {strides = array<i32>} : memref<128x256xf32, #tpu.memory_space<vmem>>, vector<128x256xf32>,
    return
  }
  func.func @transform_0(%arg0: i32, %arg1: i32) -> (i32, i32) {
    %c0_i32 = arith.constant 0 : i32
    %c0_i32_0 = arith.constant 0 : i32
    return %arg0, %c0_i32 : i32, i32
  }
  func.func @transform_1(%arg0: i32, %arg1: i32) -> (i32, i32) {
    %c0_i32 = arith.constant 0 : i32
    %c0_i32_0 = arith.constant 0 : i32
    return %c0_i32, %arg1 : i32, i32
  }
  func.func @transform_2(%arg0: i32, %arg1: i32) -> (i32, i32) {
    %c0_i32 = arith.constant 0 : i32
    %c0_i32_0 = arith.constant 0 : i32
    return %c0_i32, %arg1 : i32, i32
  }
  func.func @transform_3(%arg0: i32, %arg1: i32) -> (i32, i32) {
    %c0_i32 = arith.constant 0 : i32
    %c0_i32_0 = arith.constant 0 : i32
    return %arg1, %c0_i32 : i32, i32
  }
  func.func @transform_4(%arg0: i32, %arg1: i32) -> (i32, i32) {
    %c0_i32 = arith.constant 0 : i32
    %c0_i32_0 = arith.constant 0 : i32
    %c0_i32_1 = arith.constant 0 : i32
    return %c0_i32, %c0_i32_0 : i32, i32
  }
  func.func @transform_5(%arg0: i32, %arg1: i32) -> (i32, i32) {
    %c0_i32 = arith.constant 0 : i32
    %c0_i32_0 = arith.constant 0 : i32
    return %arg0, %c0_i32 : i32, i32
  }
}

</mosaic_0001>

<bundles_post_ra>
// kernel: feed_forward.1
= control target key start
LH: loop header
LB: loop body
LE: loop exit
PB: predicated region body
PF: predicated region fallthrough
CT: control target
= control target key end

     0   :  { %s1790_s1 = inlined_call_operand.vmem [shape: f32[256,256], index: 1, kind: input, shape index: {}]   ;;  %s1791_s0 = inlined_call_operand.vmem [shape: f32[128,256], index: 0, kind: input, shape index: {}]   ;;  %s1792_s3 = inlined_call_operand.vmem [shape: f32[256,256], index: 3, kind: input, shape index: {}]   ;;  %s1793_s2 = inlined_call_operand.vmem [shape: f32[1,256], index: 2, kind: input, shape index: {}]   ;;  %s1794_s4 = inlined_call_operand.vmem [shape: f32[1,256], index: 4, kind: input, shape index: {}]   ;;  %s1795_s5 = inlined_call_operand.vmem [shape: f32[128,256], index: 5, kind: output, shape index: {}]  }
   0x1   :  { %v101_v0 = vld [vmem:[%s1790_s1 + $0x8] sm:$0xff]  ;;  %v103_v1 = vld [vmem:[%s1790_s1 + $0x18] sm:$0xff]  ;;  %v100_v2 = vld [vmem:[%s1790_s1] sm:$0xff] }
   0x2   :  { %v822_v3 = vpack.c.bf16 %v103_v1, %v101_v0  ;;  %v102_v4 = vld [vmem:[%s1790_s1 + $0x10] sm:$0xff]  ;;  %v105_v5 = vld [vmem:[%s1790_s1 + $0x28] sm:$0xff]  ;;  %v107_v6 = vld [vmem:[%s1790_s1 + $0x38] sm:$0xff] }
   0x3   :  { %v824_v7 = vpack.c.bf16 %v102_v4, %v100_v2  ;;  %v826_v8 = vpack.c.bf16 %v107_v6, %v105_v5  ;;  %v104_v9 = vld [vmem:[%s1790_s1 + $0x20] sm:$0xff]  ;;  %v106_v10 = vld [vmem:[%s1790_s1 + $0x30] sm:$0xff]  ;;  %v109_v11 = vld [vmem:[%s1790_s1 + $0x48] sm:$0xff] }
   0x4   :  { %823 = vmatprep.subr.bf16.mxu0 %v822_v3  ;;  %v111_v12 = vld [vmem:[%s1790_s1 + $0x58] sm:$0xff]  ;;  %v828_v13 = vpack.c.bf16 %v106_v10, %v104_v9  ;;  %v108_v15 = vld [vmem:[%s1790_s1 + $0x40] sm:$0xff]  ;;  %v110_v16 = vld [vmem:[%s1790_s1 + $0x50] sm:$0xff] }
   0x5   :  { %825 = vmatpush1.bf16.msra.mxu0 %v824_v7  ;;  %v830_v14 = vpack.c.bf16 %v111_v12, %v109_v11  ;;  %v113_v17 = vld [vmem:[%s1790_s1 + $0x68] sm:$0xff]  ;;  %v115_v18 = vld [vmem:[%s1790_s1 + $0x78] sm:$0xff]  ;;  %v832_v19 = vpack.c.bf16 %v110_v16, %v108_v15  ;;  %v112_v21 = vld [vmem:[%s1790_s1 + $0x60] sm:$0xff] }
   0x6   :  { %827 = vmatprep.subr.bf16.mxu0 %v826_v8  ;;  %v834_v20 = vpack.c.bf16 %v115_v18, %v113_v17  ;;  %v114_v22 = vld [vmem:[%s1790_s1 + $0x70] sm:$0xff]  ;;  %v117_v23 = vld [vmem:[%s1790_s1 + $0x88] sm:$0xff]  ;;  %v119_v24 = vld [vmem:[%s1790_s1 + $0x98] sm:$0xff] }
   0x7   :  { %v836_v25 = vpack.c.bf16 %v114_v22, %v112_v21  ;;  %v838_v26 = vpack.c.bf16 %v119_v24, %v117_v23  ;;  %v116_v27 = vld [vmem:[%s1790_s1 + $0x80] sm:$0xff]  ;;  %v118_v28 = vld [vmem:[%s1790_s1 + $0x90] sm:$0xff]  ;;  %v121_v29 = vld [vmem:[%s1790_s1 + $0xa8] sm:$0xff] }
   0x8   :  { %v123_v30 = vld [vmem:[%s1790_s1 + $0xb8] sm:$0xff]  ;;  %v840_v31 = vpack.c.bf16 %v118_v28, %v116_v27  ;;  %v120_v33 = vld [vmem:[%s1790_s1 + $0xa0] sm:$0xff]  ;;  %v122_v34 = vld [vmem:[%s1790_s1 + $0xb0] sm:$0xff] }
   0x9   :  { %829 = vmatpush1.bf16.msra.mxu0 %v828_v13  ;;  %v842_v32 = vpack.c.bf16 %v123_v30, %v121_v29  ;;  %v125_v35 = vld [vmem:[%s1790_s1 + $0xc8] sm:$0xff]  ;;  %v127_v36 = vld [vmem:[%s1790_s1 + $0xd8] sm:$0xff]  ;;  %v844_v37 = vpack.c.bf16 %v122_v34, %v120_v33  ;;  %v124_v39 = vld [vmem:[%s1790_s1 + $0xc0] sm:$0xff] }
   0xa   :  { %831 = vmatprep.subr.bf16.mxu0 %v830_v14  ;;  %v846_v38 = vpack.c.bf16 %v127_v36, %v125_v35  ;;  %v126_v40 = vld [vmem:[%s1790_s1 + $0xd0] sm:$0xff]  ;;  %v69_v41 = vld [vmem:[%s1791_s0 + $0x8] sm:$0xff]  ;;  %v131_v43 = vld [vmem:[%s1790_s1 + $0xf8] sm:$0xff] }
   0xb   :  { %v129_v42 = vld [vmem:[%s1790_s1 + $0xe8] sm:$0xff]  ;;  %240 = vmatprep.mubr.f32.mxu0 %v69_v41  ;;  %v848_v44 = vpack.c.bf16 %v126_v40, %v124_v39  ;;  %v128_v46 = vld [vmem:[%s1790_s1 + $0xe0] sm:$0xff]  ;;  %v130_v47 = vld [vmem:[%s1790_s1 + $0xf0] sm:$0xff] }
   0xc   :  { %v850_v45 = vpack.c.bf16 %v131_v43, %v129_v42  ;;  %v133_v48 = vld [vmem:[%s1790_s1 + $0x108] sm:$0xff]  ;;  %v135_v49 = vld [vmem:[%s1790_s1 + $0x118] sm:$0xff]  ;;  %v852_v50 = vpack.c.bf16 %v130_v47, %v128_v46  ;;  %v132_v52 = vld [vmem:[%s1790_s1 + $0x100] sm:$0xff] }
   0xd   :  { %833 = vmatpush1.bf16.msra.mxu0 %v832_v19  ;;  %v854_v51 = vpack.c.bf16 %v135_v49, %v133_v48  ;;  %v134_v53 = vld [vmem:[%s1790_s1 + $0x110] sm:$0xff]  ;;  %v137_v54 = vld [vmem:[%s1790_s1 + $0x128] sm:$0xff]  ;;  %v139_v55 = vld [vmem:[%s1790_s1 + $0x138] sm:$0xff] }
   0xe   :  { %835 = vmatprep.subr.bf16.mxu0 %v834_v20  ;;  %v136_v56 = vld [vmem:[%s1790_s1 + $0x120] sm:$0xff]  ;;  %v138_v57 = vld [vmem:[%s1790_s1 + $0x130] sm:$0xff]  ;;  %v856_v58 = vpack.c.bf16 %v134_v53, %v132_v52  ;;  %v141_v59 = vld [vmem:[%s1790_s1 + $0x148] sm:$0xff]  ;;  %v858_v0 = vpack.c.bf16 %v139_v55, %v137_v54 }
   0xf   :  { %v143_v60 = vld [vmem:[%s1790_s1 + $0x158] sm:$0xff]  ;;  %v530_v61 = vld [vmem:[%s1792_s3 + $0x8] sm:$0xff]  ;;  %v529_v63 = vld [vmem:[%s1792_s3] sm:$0xff]  ;;  %v860_v11 = vpack.c.bf16 %v138_v57, %v136_v56 }
  0x10   :  { %v532_v62 = vld [vmem:[%s1792_s3 + $0x18] sm:$0xff]  ;;  %v531_v2 = vld [vmem:[%s1792_s3 + $0x10] sm:$0xff]  ;;  %v534_v3 = vld [vmem:[%s1792_s3 + $0x28] sm:$0xff]  ;;  %v862_v15 = vpack.c.bf16 %v143_v60, %v141_v59 }
  0x11   :  { %837 = vmatpush1.bf16.msra.mxu0 %v836_v25  ;;  %v886_v1 = vpack.c.bf16 %v532_v62, %v530_v61  ;;  %v536_v4 = vld [vmem:[%s1792_s3 + $0x38] sm:$0xff]  ;;  %v888_v5 = vpack.c.bf16 %v531_v2, %v529_v63  ;;  %v533_v7 = vld [vmem:[%s1792_s3 + $0x20] sm:$0xff]  ;;  %v535_v8 = vld [vmem:[%s1792_s3 + $0x30] sm:$0xff] }
  0x12   :  { %839 = vmatprep.subr.bf16.mxu0 %v838_v26  ;;  %v890_v6 = vpack.c.bf16 %v536_v4, %v534_v3  ;;  %v538_v9 = vld [vmem:[%s1792_s3 + $0x48] sm:$0xff]  ;;  %v540_v10 = vld [vmem:[%s1792_s3 + $0x58] sm:$0xff]  ;;  %v140_v12 = vld [vmem:[%s1790_s1 + $0x140] sm:$0xff]  ;;  %v892_v14 = vpack.c.bf16 %v535_v8, %v533_v7 }
  0x13   :  { %887 = vmatprep.subr.bf16.mxu1 %v886_v1  ;;  %v142_v13 = vld [vmem:[%s1790_s1 + $0x150] sm:$0xff]  ;;  %v145_v16 = vld [vmem:[%s1790_s1 + $0x168] sm:$0xff]  ;;  %v894_v17 = vpack.c.bf16 %v540_v10, %v538_v9  ;;  %v537_v18 = vld [vmem:[%s1792_s3 + $0x40] sm:$0xff] }
  0x14   :  { %889 = vmatpush1.bf16.msra.mxu1 %v888_v5  ;;  %v539_v19 = vld [vmem:[%s1792_s3 + $0x50] sm:$0xff]  ;;  %v147_v20 = vld [vmem:[%s1790_s1 + $0x178] sm:$0xff]  ;;  %v542_v21 = vld [vmem:[%s1792_s3 + $0x68] sm:$0xff]  ;;  %v864_v23 = vpack.c.bf16 %v142_v13, %v140_v12 }
  0x15   :  { %841 = vmatpush1.bf16.msra.mxu0 %v840_v31  ;;  %891 = vmatprep.subr.bf16.mxu1 %v890_v6  ;;  %v544_v22 = vld [vmem:[%s1792_s3 + $0x78] sm:$0xff]  ;;  %v144_v24 = vld [vmem:[%s1790_s1 + $0x160] sm:$0xff]  ;;  %v146_v25 = vld [vmem:[%s1790_s1 + $0x170] sm:$0xff]  ;;  %v896_v26 = vpack.c.bf16 %v539_v19, %v537_v18  ;;  %v866_v27 = vpack.c.bf16 %v147_v20, %v145_v16 }
  0x16   :  { %843 = vmatprep.subr.bf16.mxu0 %v842_v32  ;;  %v149_v28 = vld [vmem:[%s1790_s1 + $0x188] sm:$0xff]  ;;  %v898_v29 = vpack.c.bf16 %v544_v22, %v542_v21  ;;  %v541_v30 = vld [vmem:[%s1792_s3 + $0x60] sm:$0xff]  ;;  %v543_v31 = vld [vmem:[%s1792_s3 + $0x70] sm:$0xff]  ;;  %v868_v35 = vpack.c.bf16 %v146_v25, %v144_v24 }
  0x17   :  { %v151_v32 = vld [vmem:[%s1790_s1 + $0x198] sm:$0xff]  ;;  %v546_v33 = vld [vmem:[%s1792_s3 + $0x88] sm:$0xff]  ;;  %v148_v36 = vld [vmem:[%s1790_s1 + $0x180] sm:$0xff] }
  0x18   :  { %893 = vmatpush1.bf16.msra.mxu1 %v892_v14  ;;  %v548_v34 = vld [vmem:[%s1792_s3 + $0x98] sm:$0xff]  ;;  %v870_v39 = vpack.c.bf16 %v151_v32, %v149_v28  ;;  %v153_v40 = vld [vmem:[%s1790_s1 + $0x1a8] sm:$0xff]  ;;  %v545_v42 = vld [vmem:[%s1792_s3 + $0x80] sm:$0xff] }
  0x19   :  { %845 = vmatpush1.bf16.msra.mxu0 %v844_v37  ;;  %895 = vmatprep.subr.bf16.mxu1 %v894_v17  ;;  %v150_v37 = vld [vmem:[%s1790_s1 + $0x190] sm:$0xff]  ;;  %v902_v41 = vpack.c.bf16 %v548_v34, %v546_v33  ;;  %v552_v46 = vld [vmem:[%s1792_s3 + $0xb8] sm:$0xff]  ;;  %v152_v48 = vld [vmem:[%s1790_s1 + $0x1a0] sm:$0xff] }
  0x1a   :  { %847 = vmatprep.subr.bf16.mxu0 %v846_v38  ;;  %v900_v38 = vpack.c.bf16 %v543_v31, %v541_v30  ;;  %v547_v43 = vld [vmem:[%s1792_s3 + $0x90] sm:$0xff]  ;;  %v872_v47 = vpack.c.bf16 %v150_v37, %v148_v36  ;;  %v157_v52 = vld [vmem:[%s1790_s1 + $0x1c8] sm:$0xff]  ;;  %v549_v54 = vld [vmem:[%s1792_s3 + $0xa0] sm:$0xff] }
  0x1b   :  { %v154_v49 = vld [vmem:[%s1790_s1 + $0x1b0] sm:$0xff]  ;;  %v159_v56 = vld [vmem:[%s1790_s1 + $0x1d8] sm:$0xff]  ;;  %v554_v57 = vld [vmem:[%s1792_s3 + $0xc8] sm:$0xff] }
  0x1c   :  { %897 = vmatpush1.bf16.msra.mxu1 %v896_v26  ;;  %v551_v55 = vld [vmem:[%s1792_s3 + $0xb0] sm:$0xff]  ;;  %v876_v59 = vpack.c.bf16 %v154_v49, %v152_v48  ;;  %v156_v60 = vld [vmem:[%s1790_s1 + $0x1c0] sm:$0xff]  ;;  %v878_v63 = vpack.c.bf16 %v159_v56, %v157_v52  ;;  %v163_v4 = vld [vmem:[%s1790_s1 + $0x1f8] sm:$0xff] }
  0x1d   :  { %849 = vmatpush1.bf16.msra.mxu0 %v848_v44  ;;  %899 = vmatprep.subr.bf16.mxu1 %v898_v29  ;;  %v155_v44 = vld [vmem:[%s1790_s1 + $0x1b8] sm:$0xff]  ;;  %v158_v61 = vld [vmem:[%s1790_s1 + $0x1d0] sm:$0xff]  ;;  %v908_v62 = vpack.c.bf16 %v551_v55, %v549_v54  ;;  %v553_v2 = vld [vmem:[%s1792_s3 + $0xc0] sm:$0xff] }
  0x1e   :  { %851 = vmatprep.subr.bf16.mxu0 %v850_v45  ;;  %v550_v45 = vld [vmem:[%s1792_s3 + $0xa8] sm:$0xff]  ;;  %v555_v3 = vld [vmem:[%s1792_s3 + $0xd0] sm:$0xff]  ;;  %v560_v6 = vld [vmem:[%s1792_s3 + $0xf8] sm:$0xff]  ;;  %v880_v7 = vpack.c.bf16 %v158_v61, %v156_v60 }
  0x1f   :  { %v906_v53 = vpack.c.bf16 %v552_v46, %v550_v45  ;;  %v558_v5 = vld [vmem:[%s1792_s3 + $0xe8] sm:$0xff]  ;;  %v160_v8 = vld [vmem:[%s1790_s1 + $0x1e0] sm:$0xff]  ;;  %v912_v9 = vpack.c.bf16 %v555_v3, %v553_v2  ;;  %v559_v14 = vld [vmem:[%s1792_s3 + $0xf0] sm:$0xff] }
  0x20   :  { %901 = vmatpush1.bf16.msra.mxu1 %v900_v38  ;;  %v914_v12 = vpack.c.bf16 %v560_v6, %v558_v5  ;;  %v557_v13 = vld [vmem:[%s1792_s3 + $0xe0] sm:$0xff]  ;;  %v564_v16 = vld [vmem:[%s1792_s3 + $0x118] sm:$0xff]  ;;  %v563_v21 = vld [vmem:[%s1792_s3 + $0x110] sm:$0xff] }
  0x21   :  { %853 = vmatpush1.bf16.msra.mxu0 %v852_v50  ;;  %v904_v50 = vpack.c.bf16 %v547_v43, %v545_v42  ;;  %903 = vmatprep.subr.bf16.mxu1 %v902_v41  ;;  %v916_v18 = vpack.c.bf16 %v559_v14, %v557_v13  ;;  %v561_v20 = vld [vmem:[%s1792_s3 + $0x100] sm:$0xff]  ;;  %v566_v22 = vld [vmem:[%s1792_s3 + $0x128] sm:$0xff]  ;;  %v71_v26 = vld [vmem:[%s1791_s0 + $0x18] sm:$0xff] }
  0x22   :  { %855 = vmatprep.subr.bf16.mxu0 %v854_v51  ;;  %v874_v51 = vpack.c.bf16 %v155_v44, %v153_v40  ;;  %v68_v24 = vld [vmem:[%s1791_s0] sm:$0xff]  ;;  %v920_v25 = vpack.c.bf16 %v563_v21, %v561_v20  ;;  %v567_v29 = vld [vmem:[%s1792_s3 + $0x130] sm:$0xff]  ;;  %v570_v30 = vld [vmem:[%s1792_s3 + $0x148] sm:$0xff] }
  0x23   :  { %v565_v28 = vld [vmem:[%s1792_s3 + $0x120] sm:$0xff]  ;;  %v572_v31 = vld [vmem:[%s1792_s3 + $0x158] sm:$0xff]  ;;  %v70_v32 = vld [vmem:[%s1791_s0 + $0x10] sm:$0xff] }
  0x24   :  { %905 = vmatpush1.bf16.msra.mxu1 %v904_v50  ;;  %v924_v33 = vpack.c.bf16 %v567_v29, %v565_v28  ;;  %v73_v34 = vld [vmem:[%s1791_s0 + $0x28] sm:$0xff]  ;;  %v569_v36 = vld [vmem:[%s1792_s3 + $0x140] sm:$0xff]  ;;  %v571_v37 = vld [vmem:[%s1792_s3 + $0x150] sm:$0xff] }
  0x25   :  { %857 = vmatpush1.bf16.msra.mxu0 %v856_v58  ;;  %v556_v58 = vld [vmem:[%s1792_s3 + $0xd8] sm:$0xff]  ;;  %907 = vmatprep.subr.bf16.mxu1 %v906_v53  ;;  %v72_v38 = vld [vmem:[%s1791_s0 + $0x20] sm:$0xff]  ;;  %v74_v41 = vld [vmem:[%s1791_s0 + $0x30] sm:$0xff] }
  0x26   :  { %859 = vmatprep.subr.bf16.mxu0 %v858_v0  ;;  %v161_v0 = vld [vmem:[%s1790_s1 + $0x1e8] sm:$0xff]  ;;  %v910_v1 = vpack.c.bf16 %v556_v58, %v554_v57  ;;  %v75_v40 = vld [vmem:[%s1791_s0 + $0x38] sm:$0xff]  ;;  %v76_v43 = vld [vmem:[%s1791_s0 + $0x40] sm:$0xff] }
  0x27   :  { %v882_v10 = vpack.c.bf16 %v163_v4, %v161_v0  ;;  %v77_v42 = vld [vmem:[%s1791_s0 + $0x48] sm:$0xff]  ;;  %v79_v44 = vld [vmem:[%s1791_s0 + $0x58] sm:$0xff]  ;;  %v78_v45 = vld [vmem:[%s1791_s0 + $0x50] sm:$0xff] }
  0x28   :  { %909 = vmatpush1.bf16.msra.mxu1 %v908_v62  ;;  %v81_v46 = vld [vmem:[%s1791_s0 + $0x68] sm:$0xff]  ;;  %v83_v48 = vld [vmem:[%s1791_s0 + $0x78] sm:$0xff]  ;;  %v82_v49 = vld [vmem:[%s1791_s0 + $0x70] sm:$0xff] }
  0x29   :  { %861 = vmatpush1.bf16.msra.mxu0 %v860_v11  ;;  %v162_v11 = vld [vmem:[%s1790_s1 + $0x1f0] sm:$0xff]  ;;  %911 = vmatprep.subr.bf16.mxu1 %v910_v1  ;;  %v85_v50 = vld [vmem:[%s1791_s0 + $0x88] sm:$0xff]  ;;  %v87_v52 = vld [vmem:[%s1791_s0 + $0x98] sm:$0xff] }
  0x2a   :  { %863 = vmatprep.subr.bf16.mxu0 %v862_v15  ;;  %v562_v15 = vld [vmem:[%s1792_s3 + $0x108] sm:$0xff]  ;;  %v884_v17 = vpack.c.bf16 %v162_v11, %v160_v8  ;;  %v86_v53 = vld [vmem:[%s1791_s0 + $0x90] sm:$0xff]  ;;  %v88_v55 = vld [vmem:[%s1791_s0 + $0xa0] sm:$0xff] }
  0x2b   :  { %v918_v19 = vpack.c.bf16 %v564_v16, %v562_v15  ;;  %v89_v54 = vld [vmem:[%s1791_s0 + $0xa8] sm:$0xff]  ;;  %v91_v56 = vld [vmem:[%s1791_s0 + $0xb8] sm:$0xff]  ;;  %v90_v57 = vld [vmem:[%s1791_s0 + $0xb0] sm:$0xff] }
  0x2c   :  { %913 = vmatpush1.bf16.msra.mxu1 %v912_v9  ;;  %v93_v58 = vld [vmem:[%s1791_s0 + $0xc8] sm:$0xff]  ;;  %v95_v60 = vld [vmem:[%s1791_s0 + $0xd8] sm:$0xff]  ;;  %v94_v61 = vld [vmem:[%s1791_s0 + $0xd0] sm:$0xff] }
  0x2d   :  { %865 = vmatpush1.bf16.msra.mxu0 %v864_v23  ;;  %915 = vmatprep.subr.bf16.mxu1 %v914_v12  ;;  %v568_v23 = vld [vmem:[%s1792_s3 + $0x138] sm:$0xff]  ;;  %v97_v62 = vld [vmem:[%s1791_s0 + $0xe8] sm:$0xff]  ;;  %v98_v1 = vld [vmem:[%s1791_s0 + $0xf0] sm:$0xff] }
  0x2e   :  { %867 = vmatprep.subr.bf16.mxu0 %v866_v27  ;;  %v922_v27 = vpack.c.bf16 %v568_v23, %v566_v22  ;;  %v99_v0 = vld [vmem:[%s1791_s0 + $0xf8] sm:$0xff]  ;;  %v574_v2 = vld [vmem:[%s1792_s3 + $0x168] sm:$0xff]  ;;  %v573_v5 = vld [vmem:[%s1792_s3 + $0x160] sm:$0xff] }
  0x2f   :  { %v576_v3 = vld [vmem:[%s1792_s3 + $0x178] sm:$0xff]  ;;  %v575_v6 = vld [vmem:[%s1792_s3 + $0x170] sm:$0xff]  ;;  %v578_v8 = vld [vmem:[%s1792_s3 + $0x188] sm:$0xff] }
  0x30   :  { %917 = vmatpush1.bf16.msra.mxu1 %v916_v18  ;;  %v930_v4 = vpack.c.bf16 %v576_v3, %v574_v2  ;;  %v580_v9 = vld [vmem:[%s1792_s3 + $0x198] sm:$0xff]  ;;  %v577_v11 = vld [vmem:[%s1792_s3 + $0x180] sm:$0xff]  ;;  %v579_v12 = vld [vmem:[%s1792_s3 + $0x190] sm:$0xff] }
  0x31   :  { %869 = vmatpush1.bf16.msra.mxu0 %v868_v35  ;;  %919 = vmatprep.subr.bf16.mxu1 %v918_v19  ;;  %v926_v35 = vpack.c.bf16 %v572_v31, %v570_v30  ;;  %v936_v13 = vpack.c.bf16 %v579_v12, %v577_v11  ;;  %v582_v14 = vld [vmem:[%s1792_s3 + $0x1a8] sm:$0xff]  ;;  %v584_v15 = vld [vmem:[%s1792_s3 + $0x1b8] sm:$0xff]  ;;  %v583_v18 = vld [vmem:[%s1792_s3 + $0x1b0] sm:$0xff] }
  0x32   :  { %871 = vmatprep.subr.bf16.mxu0 %v870_v39  ;;  %v928_v39 = vpack.c.bf16 %v571_v37, %v569_v36  ;;  %v938_v16 = vpack.c.bf16 %v584_v15, %v582_v14  ;;  %v586_v20 = vld [vmem:[%s1792_s3 + $0x1c8] sm:$0xff]  ;;  %v588_v21 = vld [vmem:[%s1792_s3 + $0x1d8] sm:$0xff]  ;;  %v585_v23 = vld [vmem:[%s1792_s3 + $0x1c0] sm:$0xff] }
  0x33   :  { %v942_v22 = vpack.c.bf16 %v588_v21, %v586_v20  ;;  %v589_v29 = vld [vmem:[%s1792_s3 + $0x1e0] sm:$0xff]  ;;  %v591_v30 = vld [vmem:[%s1792_s3 + $0x1f0] sm:$0xff] }
  0x34   :  { %921 = vmatpush1.bf16.msra.mxu1 %v920_v25  ;;  %v948_v31 = vpack.c.bf16 %v591_v30, %v589_v29 }
  0x35   :  { %873 = vmatpush1.bf16.msra.mxu0 %v872_v47  ;;  %923 = vmatprep.subr.bf16.mxu1 %v922_v27  ;;  %v80_v47 = vld [vmem:[%s1791_s0 + $0x60] sm:$0xff]  ;;  %v592_v27 = vld [vmem:[%s1792_s3 + $0x1f8] sm:$0xff] }
  0x36   :  { %875 = vmatprep.subr.bf16.mxu0 %v874_v51  ;;  %v84_v51 = vld [vmem:[%s1791_s0 + $0x80] sm:$0xff] }
  0x38   :  { %925 = vmatpush1.bf16.msra.mxu1 %v924_v33 }
  0x39   :  { %877 = vmatpush1.bf16.msra.mxu0 %v876_v59  ;;  %927 = vmatprep.subr.bf16.mxu1 %v926_v35  ;;  %v92_v59 = vld [vmem:[%s1791_s0 + $0xc0] sm:$0xff] }
  0x3a   :  { %879 = vmatprep.subr.bf16.mxu0 %v878_v63  ;;  %v96_v63 = vld [vmem:[%s1791_s0 + $0xe0] sm:$0xff] }
  0x3b   :  { %v164_v35 = vld [vmem:[%s1793_s2] sm:$0x3] }
  0x3c   :  { %929 = vmatpush1.bf16.msra.mxu1 %v928_v39 }
  0x3d   :  { %881 = vmatpush1.bf16.msra.mxu0 %v880_v7  ;;  %v932_v7 = vpack.c.bf16 %v575_v6, %v573_v5  ;;  %931 = vmatprep.subr.bf16.mxu1 %v930_v4 }
  0x3e   :  { %883 = vmatprep.subr.bf16.mxu0 %v882_v10  ;;  %v934_v10 = vpack.c.bf16 %v580_v9, %v578_v8 }
  0x40   :  { %933 = vmatpush1.bf16.msra.mxu1 %v932_v7 }
  0x41   :  { %885 = vmatpush1.bf16.msra.mxu0 %v884_v17  ;;  %935 = vmatprep.subr.bf16.mxu1 %v934_v10  ;;  %v581_v17 = vld [vmem:[%s1792_s3 + $0x1a0] sm:$0xff] }
  0x42   :  { %v940_v19 = vpack.c.bf16 %v583_v18, %v581_v17 }
  0x44   :  { %241 = vmatmul.mubr.f32.vlgmr.msra.gmra.mrb[0].mxu0 %v68_v24  ;;  %937 = vmatpush1.bf16.msra.mxu1 %v936_v13  ;;  %v587_v24 = vld [vmem:[%s1792_s3 + $0x1d0] sm:$0xff] }
  0x45   :  { %246 = vmatprep.mubr.f32.mxu0 %v71_v26  ;;  %939 = vmatprep.subr.bf16.mxu1 %v938_v16  ;;  %v944_v25 = vpack.c.bf16 %v587_v24, %v585_v23  ;;  %v590_v26 = vld [vmem:[%s1792_s3 + $0x1e8] sm:$0xff] }
  0x46   :  { %v946_v28 = vpack.c.bf16 %v592_v27, %v590_v26 }
  0x48   :  { %247 = vmatmul.mubr.f32.gmra.mrb[2].mxu0 %v70_v32  ;;  %941 = vmatpush1.bf16.msra.mxu1 %v940_v19  ;;  %v26_v32 = vlaneseq }
  0x49   :  { %252 = vmatprep.mubr.f32.mxu0 %v73_v34  ;;  %943 = vmatprep.subr.bf16.mxu1 %v942_v22 }
  0x4a   :  { %v1524_v33 = vshrl.u32 %v26_v32, 7 }
  0x4c   :  { %253 = vmatmul.mubr.f32.gmra.mrb[4].mxu0 %v72_v38  ;;  %945 = vmatpush1.bf16.msra.mxu1 %v944_v25  ;;  %v28_v34 = vsub.s32 0, %v1524_v33  ;;  %v32_v36 = vsub.s32 1, %v1524_v33 }
  0x4d   :  { %258 = vmatprep.mubr.f32.mxu0 %v75_v40  ;;  %947 = vmatprep.subr.bf16.mxu1 %v946_v28 }
  0x4e   :  { %v1533_v37 = vrot.slane %v164_v35, %v28_v34  ;;  %v1537_v38 = vrot.slane %v164_v35, %v32_v36 }
  0x50   :  { %259 = vmatmul.mubr.f32.gmra.mrb[6].mxu0 %v74_v41  ;;  %949 = vmatpush1.bf16.msra.mxu1 %v948_v31 }
  0x51   :  { %264 = vmatprep.mubr.f32.mxu0 %v77_v42 }
  0x54   :  { %265 = vmatmul.mubr.f32.gmra.mrb[8].mxu0 %v76_v43 }
  0x55   :  { %270 = vmatprep.mubr.f32.mxu0 %v79_v44 }
  0x58   :  { %271 = vmatmul.mubr.f32.gmra.mrb[10].mxu0 %v78_v45 }
  0x59   :  { %276 = vmatprep.mubr.f32.mxu0 %v81_v46 }
  0x5c   :  { %277 = vmatmul.mubr.f32.gmra.mrb[12].mxu0 %v80_v47 }
  0x5d   :  { %282 = vmatprep.mubr.f32.mxu0 %v83_v48 }
  0x60   :  { %283 = vmatmul.mubr.f32.gmra.mrb[14].mxu0 %v82_v49 }
  0x61   :  { %288 = vmatprep.mubr.f32.mxu0 %v85_v50 }
  0x64   :  { %289 = vmatmul.mubr.f32.gmra.mrb[16].mxu0 %v84_v51 }
  0x65   :  { %294 = vmatprep.mubr.f32.mxu0 %v87_v52 }
  0x68   :  { %295 = vmatmul.mubr.f32.gmra.mrb[18].mxu0 %v86_v53 }
  0x69   :  { %300 = vmatprep.mubr.f32.mxu0 %v89_v54 }
  0x6c   :  { %301 = vmatmul.mubr.f32.gmra.mrb[20].mxu0 %v88_v55 }
  0x6d   :  { %306 = vmatprep.mubr.f32.mxu0 %v91_v56 }
  0x70   :  { %307 = vmatmul.mubr.f32.gmra.mrb[22].mxu0 %v90_v57 }
  0x71   :  { %312 = vmatprep.mubr.f32.mxu0 %v93_v58 }
  0x74   :  { %313 = vmatmul.mubr.f32.gmra.mrb[24].mxu0 %v92_v59 }
  0x75   :  { %318 = vmatprep.mubr.f32.mxu0 %v95_v60 }
  0x78   :  { %319 = vmatmul.mubr.f32.gmra.mrb[26].mxu0 %v94_v61 }
  0x79   :  { %324 = vmatprep.mubr.f32.mxu0 %v97_v62 }
  0x7c   :  { %325 = vmatmul.mubr.f32.gmra.mrb[28].mxu0 %v96_v63 }
  0x7d   :  { %330 = vmatprep.mubr.f32.mxu0 %v99_v0 }
  0x80   :  { %331 = vmatmul.mubr.f32.gmra.mrb[30].mxu0 %v98_v1 }
 0x117   :  { %v242_v39 = vpop.f32.mrb[0].mxu0 }
 0x118   :  { %v243_v40 = vadd.f32 %v242_v39, %v1533_v37  ;;  %v244_v41 = vpop.f32.mrb[1].mxu0 }
 0x119   :  { %v245_v42 = vadd.f32 %v244_v41, %v1537_v38 }
 0x11a   :  { %v369_v43 = vmul.f32 0.70710677, %v243_v40  ;;  %v337_v7 = vmul.f32 0.5, %v243_v40 }
 0x11b   :  { %v370_v44 = vmul.f32 0.70710677, %v245_v42  ;;  %v248_v45 = vpop.f32.mrb[2].mxu0  ;;  %v338_v5 = vmul.f32 0.5, %v245_v42 }
 0x11c   :  { %950 = verf.f32 %v369_v43  ;;  %v249_v46 = vadd.f32 %v248_v45, %v1533_v37  ;;  %v250_v47 = vpop.f32.mrb[3].mxu0 }
 0x11d   :  { %952 = verf.f32 %v370_v44  ;;  %v251_v48 = vadd.f32 %v250_v47, %v1537_v38 }
 0x11e   :  { %v371_v49 = vmul.f32 0.70710677, %v249_v46  ;;  %v339_v21 = vmul.f32 0.5, %v249_v46 }
 0x11f   :  { %v372_v50 = vmul.f32 0.70710677, %v251_v48  ;;  %v254_v51 = vpop.f32.mrb[4].mxu0  ;;  %v340_v17 = vmul.f32 0.5, %v251_v48 }
 0x120   :  { %954 = verf.f32 %v371_v49  ;;  %v255_v52 = vadd.f32 %v254_v51, %v1533_v37  ;;  %v256_v53 = vpop.f32.mrb[5].mxu0 }
 0x121   :  { %956 = verf.f32 %v372_v50  ;;  %v257_v54 = vadd.f32 %v256_v53, %v1537_v38 }
 0x122   :  { %v373_v55 = vmul.f32 0.70710677, %v255_v52  ;;  %v341_v40 = vmul.f32 0.5, %v255_v52 }
 0x123   :  { %v374_v56 = vmul.f32 0.70710677, %v257_v54  ;;  %v260_v57 = vpop.f32.mrb[6].mxu0  ;;  %v342_v31 = vmul.f32 0.5, %v257_v54 }
 0x124   :  { %958 = verf.f32 %v373_v55  ;;  %v1546_v58 = vadd.f32 %v260_v57, %v1533_v37  ;;  %v262_v59 = vpop.f32.mrb[7].mxu0 }
 0x125   :  { %960 = verf.f32 %v374_v56  ;;  %v263_v60 = vadd.f32 %v262_v59, %v1537_v38 }
 0x126   :  { %v951_v61 = vpop.eup %950  ;;  %v375_v62 = vmul.f32 0.70710677, %v1546_v58  ;;  %v343_v54 = vmul.f32 0.5, %v1546_v58 }
 0x127   :  { %v953_v63 = vpop.eup %952  ;;  %v433_v0 = vadd.f32 1.0, %v951_v61  ;;  %v376_v1 = vmul.f32 0.70710677, %v263_v60  ;;  %v266_v2 = vpop.f32.mrb[8].mxu0  ;;  %v344_v50 = vmul.f32 0.5, %v263_v60 }
 0x128   :  { %962 = verf.f32 %v375_v62  ;;  %v1551_v3 = vadd.f32 %v266_v2, %v1533_v37  ;;  %v268_v4 = vpop.f32.mrb[9].mxu0  ;;  %v434_v6 = vadd.f32 1.0, %v953_v63 }
 0x129   :  { %964 = verf.f32 %v376_v1  ;;  %v1554_v8 = vadd.f32 %v268_v4, %v1537_v38  ;;  %v465_v16 = vmul.f32 %v433_v0, %v337_v7 }
 0x12a   :  { %v955_v9 = vpop.eup %954  ;;  %v377_v10 = vmul.f32 0.70710677, %v1551_v3  ;;  %v466_v11 = vmul.f32 %v434_v6, %v338_v5  ;;  %v345_v5 = vmul.f32 0.5, %v1551_v3 }
 0x12b   :  { %v957_v12 = vpop.eup %956  ;;  %v435_v13 = vadd.f32 1.0, %v955_v9  ;;  %v378_v14 = vmul.f32 0.70710677, %v1554_v8  ;;  %v272_v15 = vpop.f32.mrb[10].mxu0  ;;  %v346_v1 = vmul.f32 0.5, %v1554_v8 }
 0x12c   :  { %v436_v18 = vadd.f32 1.0, %v957_v12  ;;  %966 = verf.f32 %v377_v10  ;;  %v1559_v19 = vadd.f32 %v272_v15, %v1533_v37  ;;  %v274_v20 = vpop.f32.mrb[11].mxu0  ;;  %657 = vmatprep.mubr.f32.mxu1 %v466_v11 }
 0x12d   :  { %968 = verf.f32 %v378_v14  ;;  %v1562_v22 = vadd.f32 %v274_v20, %v1537_v38  ;;  %658 = vmatmul.mubr.f32.vlgmr.msra.gmra.mrb[0].mxu1 %v465_v16  ;;  %v467_v30 = vmul.f32 %v435_v13, %v339_v21 }
 0x12e   :  { %v959_v23 = vpop.eup %958  ;;  %v379_v24 = vmul.f32 0.70710677, %v1559_v19  ;;  %v468_v25 = vmul.f32 %v436_v18, %v340_v17  ;;  %v347_v18 = vmul.f32 0.5, %v1559_v19 }
 0x12f   :  { %v961_v26 = vpop.eup %960  ;;  %v437_v27 = vadd.f32 1.0, %v959_v23  ;;  %v380_v28 = vmul.f32 0.70710677, %v1562_v22  ;;  %v278_v29 = vpop.f32.mrb[12].mxu0  ;;  %v348_v15 = vmul.f32 0.5, %v1562_v22 }
 0x130   :  { %v438_v32 = vadd.f32 1.0, %v961_v26  ;;  %970 = verf.f32 %v379_v24  ;;  %v1567_v35 = vadd.f32 %v278_v29, %v1533_v37  ;;  %v280_v39 = vpop.f32.mrb[13].mxu0  ;;  %663 = vmatprep.mubr.f32.mxu1 %v468_v25 }
 0x131   :  { %972 = verf.f32 %v380_v28  ;;  %v1570_v41 = vadd.f32 %v280_v39, %v1537_v38  ;;  %664 = vmatmul.mubr.f32.gmra.mrb[2].mxu1 %v467_v30  ;;  %v469_v49 = vmul.f32 %v437_v27, %v341_v40 }
 0x132   :  { %v963_v42 = vpop.eup %962  ;;  %v381_v43 = vmul.f32 0.70710677, %v1567_v35  ;;  %v470_v44 = vmul.f32 %v438_v32, %v342_v31  ;;  %v349_v32 = vmul.f32 0.5, %v1567_v35 }
 0x133   :  { %v965_v45 = vpop.eup %964  ;;  %v439_v46 = vadd.f32 1.0, %v963_v42  ;;  %v382_v47 = vmul.f32 0.70710677, %v1570_v41  ;;  %v284_v48 = vpop.f32.mrb[14].mxu0  ;;  %v350_v29 = vmul.f32 0.5, %v1570_v41 }
 0x134   :  { %v440_v51 = vadd.f32 1.0, %v965_v45  ;;  %974 = verf.f32 %v381_v43  ;;  %v1575_v52 = vadd.f32 %v284_v48, %v1533_v37  ;;  %v286_v53 = vpop.f32.mrb[15].mxu0  ;;  %669 = vmatprep.mubr.f32.mxu1 %v470_v44 }
 0x135   :  { %976 = verf.f32 %v382_v47  ;;  %v1579_v55 = vadd.f32 %v286_v53, %v1537_v38  ;;  %670 = vmatmul.mubr.f32.gmra.mrb[4].mxu1 %v469_v49  ;;  %v471_v0 = vmul.f32 %v439_v46, %v343_v54 }
 0x136   :  { %v967_v56 = vpop.eup %966  ;;  %v383_v57 = vmul.f32 0.70710677, %v1575_v52  ;;  %v472_v59 = vmul.f32 %v440_v51, %v344_v50  ;;  %v351_v51 = vmul.f32 0.5, %v1575_v52 }
 0x137   :  { %v969_v61 = vpop.eup %968  ;;  %v441_v60 = vadd.f32 1.0, %v967_v56  ;;  %v384_v62 = vmul.f32 0.70710677, %v1579_v55  ;;  %v290_v63 = vpop.f32.mrb[16].mxu0  ;;  %v352_v48 = vmul.f32 0.5, %v1579_v55 }
 0x138   :  { %v442_v2 = vadd.f32 1.0, %v969_v61  ;;  %978 = verf.f32 %v383_v57  ;;  %v1585_v58 = vadd.f32 %v290_v63, %v1533_v37  ;;  %v292_v4 = vpop.f32.mrb[17].mxu0  ;;  %675 = vmatprep.mubr.f32.mxu1 %v472_v59 }
 0x139   :  { %980 = verf.f32 %v384_v62  ;;  %v1589_v6 = vadd.f32 %v292_v4, %v1537_v38  ;;  %676 = vmatmul.mubr.f32.gmra.mrb[6].mxu1 %v471_v0  ;;  %v473_v14 = vmul.f32 %v441_v60, %v345_v5 }
 0x13a   :  { %v971_v7 = vpop.eup %970  ;;  %v385_v9 = vmul.f32 0.70710677, %v1585_v58  ;;  %v474_v10 = vmul.f32 %v442_v2, %v346_v1  ;;  %v353_v2 = vmul.f32 0.5, %v1585_v58 }
 0x13b   :  { %v973_v11 = vpop.eup %972  ;;  %v443_v8 = vadd.f32 1.0, %v971_v7  ;;  %v386_v12 = vmul.f32 0.70710677, %v1589_v6  ;;  %v296_v13 = vpop.f32.mrb[18].mxu0  ;;  %v354_v63 = vmul.f32 0.5, %v1589_v6 }
 0x13c   :  { %v444_v16 = vadd.f32 1.0, %v973_v11  ;;  %982 = verf.f32 %v385_v9  ;;  %v1595_v3 = vadd.f32 %v296_v13, %v1533_v37  ;;  %v298_v17 = vpop.f32.mrb[19].mxu0  ;;  %681 = vmatprep.mubr.f32.mxu1 %v474_v10 }
 0x13d   :  { %984 = verf.f32 %v386_v12  ;;  %v1599_v20 = vadd.f32 %v298_v17, %v1537_v38  ;;  %682 = vmatmul.mubr.f32.gmra.mrb[8].mxu1 %v473_v14  ;;  %v475_v28 = vmul.f32 %v443_v8, %v347_v18 }
 0x13e   :  { %v975_v21 = vpop.eup %974  ;;  %v387_v23 = vmul.f32 0.70710677, %v1595_v3  ;;  %v476_v24 = vmul.f32 %v444_v16, %v348_v15  ;;  %v355_v16 = vmul.f32 0.5, %v1595_v3 }
 0x13f   :  { %v977_v25 = vpop.eup %976  ;;  %v445_v22 = vadd.f32 1.0, %v975_v21  ;;  %v388_v26 = vmul.f32 0.70710677, %v1599_v20  ;;  %v302_v27 = vpop.f32.mrb[20].mxu0  ;;  %v356_v13 = vmul.f32 0.5, %v1599_v20 }
 0x140   :  { %v446_v30 = vadd.f32 1.0, %v977_v25  ;;  %986 = verf.f32 %v387_v23  ;;  %v1605_v19 = vadd.f32 %v302_v27, %v1533_v37  ;;  %v304_v31 = vpop.f32.mrb[21].mxu0  ;;  %687 = vmatprep.mubr.f32.mxu1 %v476_v24 }
 0x141   :  { %988 = verf.f32 %v388_v26  ;;  %v1609_v39 = vadd.f32 %v304_v31, %v1537_v38  ;;  %688 = vmatmul.mubr.f32.gmra.mrb[10].mxu1 %v475_v28  ;;  %v477_v47 = vmul.f32 %v445_v22, %v349_v32 }
 0x142   :  { %v979_v40 = vpop.eup %978  ;;  %v389_v42 = vmul.f32 0.70710677, %v1605_v19  ;;  %v478_v43 = vmul.f32 %v446_v30, %v350_v29  ;;  %v357_v30 = vmul.f32 0.5, %v1605_v19 }
 0x143   :  { %v981_v44 = vpop.eup %980  ;;  %v447_v41 = vadd.f32 1.0, %v979_v40  ;;  %v390_v45 = vmul.f32 0.70710677, %v1609_v39  ;;  %v308_v46 = vpop.f32.mrb[22].mxu0  ;;  %v358_v27 = vmul.f32 0.5, %v1609_v39 }
 0x144   :  { %v448_v49 = vadd.f32 1.0, %v981_v44  ;;  %990 = verf.f32 %v389_v42  ;;  %v1615_v35 = vadd.f32 %v308_v46, %v1533_v37  ;;  %v310_v50 = vpop.f32.mrb[23].mxu0  ;;  %693 = vmatprep.mubr.f32.mxu1 %v478_v43 }
 0x145   :  { %992 = verf.f32 %v390_v45  ;;  %v1619_v53 = vadd.f32 %v310_v50, %v1537_v38  ;;  %694 = vmatmul.mubr.f32.gmra.mrb[12].mxu1 %v477_v47  ;;  %v479_v62 = vmul.f32 %v447_v41, %v351_v51 }
 0x146   :  { %v983_v54 = vpop.eup %982  ;;  %v391_v56 = vmul.f32 0.70710677, %v1615_v35  ;;  %v480_v57 = vmul.f32 %v448_v49, %v352_v48  ;;  %v359_v19 = vmul.f32 0.5, %v1615_v35 }
 0x147   :  { %v985_v59 = vpop.eup %984  ;;  %v449_v55 = vadd.f32 1.0, %v983_v54  ;;  %v392_v61 = vmul.f32 0.70710677, %v1619_v53  ;;  %v314_v60 = vpop.f32.mrb[24].mxu0  ;;  %v360_v46 = vmul.f32 0.5, %v1619_v53 }
 0x148   :  { %v450_v0 = vadd.f32 1.0, %v985_v59  ;;  %994 = verf.f32 %v391_v56  ;;  %v1625_v52 = vadd.f32 %v314_v60, %v1533_v37  ;;  %v316_v1 = vpop.f32.mrb[25].mxu0  ;;  %699 = vmatprep.mubr.f32.mxu1 %v480_v57 }
 0x149   :  { %996 = verf.f32 %v392_v61  ;;  %v1629_v4 = vadd.f32 %v316_v1, %v1537_v38  ;;  %700 = vmatmul.mubr.f32.gmra.mrb[14].mxu1 %v479_v62  ;;  %v481_v12 = vmul.f32 %v449_v55, %v353_v2 }
 0x14a   :  { %v987_v5 = vpop.eup %986  ;;  %v393_v7 = vmul.f32 0.70710677, %v1625_v52  ;;  %v482_v9 = vmul.f32 %v450_v0, %v354_v63 }
 0x14b   :  { %v989_v10 = vpop.eup %988  ;;  %v451_v6 = vadd.f32 1.0, %v987_v5  ;;  %v394_v11 = vmul.f32 0.70710677, %v1629_v4  ;;  %v320_v8 = vpop.f32.mrb[26].mxu0  ;;  %v362_v53 = vmul.f32 0.5, %v1629_v4 }
 0x14c   :  { %v452_v14 = vadd.f32 1.0, %v989_v10  ;;  %998 = verf.f32 %v393_v7  ;;  %v1635_v58 = vadd.f32 %v320_v8, %v1533_v37  ;;  %v322_v15 = vpop.f32.mrb[27].mxu0  ;;  %705 = vmatprep.mubr.f32.mxu1 %v482_v9 }
 0x14d   :  { %1000 = verf.f32 %v394_v11  ;;  %v323_v17 = vadd.f32 %v322_v15, %v1537_v38  ;;  %706 = vmatmul.mubr.f32.gmra.mrb[16].mxu1 %v481_v12  ;;  %v483_v26 = vmul.f32 %v451_v6, %v355_v16 }
 0x14e   :  { %v991_v18 = vpop.eup %990  ;;  %v395_v21 = vmul.f32 0.70710677, %v1635_v58  ;;  %v484_v23 = vmul.f32 %v452_v14, %v356_v13  ;;  %v363_v5 = vmul.f32 0.5, %v1635_v58 }
 0x14f   :  { %v993_v24 = vpop.eup %992  ;;  %v453_v25 = vadd.f32 1.0, %v991_v18  ;;  %v396_v20 = vmul.f32 0.70710677, %v323_v17  ;;  %v326_v22 = vpop.f32.mrb[28].mxu0  ;;  %v364_v1 = vmul.f32 0.5, %v323_v17 }
 0x150   :  { %v454_v28 = vadd.f32 1.0, %v993_v24  ;;  %1002 = verf.f32 %v395_v21  ;;  %v327_v29 = vadd.f32 %v326_v22, %v1533_v37  ;;  %v328_v3 = vpop.f32.mrb[29].mxu0  ;;  %711 = vmatprep.mubr.f32.mxu1 %v484_v23  ;;  %v24_v24 = vld [vmem:[%s1794_s4] sm:$0x3] }
 0x151   :  { %1004 = verf.f32 %v396_v20  ;;  %v329_v31 = vadd.f32 %v328_v3, %v1537_v38  ;;  %712 = vmatmul.mubr.f32.gmra.mrb[18].mxu1 %v483_v26  ;;  %v485_v39 = vmul.f32 %v453_v25, %v357_v30  ;;  %v1656_v25 = vrot.slane %v24_v24, %v28_v34 }
 0x152   :  { %v995_v32 = vpop.eup %994  ;;  %v397_v40 = vmul.f32 0.70710677, %v327_v29  ;;  %v486_v42 = vmul.f32 %v454_v28, %v358_v27  ;;  %v365_v8 = vmul.f32 0.5, %v327_v29  ;;  %v1660_v20 = vrot.slane %v24_v24, %v32_v36 }
 0x153   :  { %v997_v43 = vpop.eup %996  ;;  %v455_v44 = vadd.f32 1.0, %v995_v32  ;;  %v398_v41 = vmul.f32 0.70710677, %v329_v31  ;;  %v332_v45 = vpop.f32.mrb[30].mxu0  ;;  %v366_v11 = vmul.f32 0.5, %v329_v31 }
 0x154   :  { %v456_v47 = vadd.f32 1.0, %v997_v43  ;;  %1006 = verf.f32 %v397_v40  ;;  %v333_v48 = vadd.f32 %v332_v45, %v1533_v37  ;;  %v334_v49 = vpop.f32.mrb[31].mxu0  ;;  %717 = vmatprep.mubr.f32.mxu1 %v486_v42  ;;  %v361_v37 = vmul.f32 0.5, %v1625_v52 }
 0x155   :  { %1008 = verf.f32 %v398_v41  ;;  %v335_v50 = vadd.f32 %v334_v49, %v1537_v38  ;;  %718 = vmatmul.mubr.f32.gmra.mrb[20].mxu1 %v485_v39  ;;  %v487_v61 = vmul.f32 %v455_v44, %v359_v19 }
 0x156   :  { %v999_v51 = vpop.eup %998  ;;  %v399_v54 = vmul.f32 0.70710677, %v333_v48  ;;  %v488_v56 = vmul.f32 %v456_v47, %v360_v46  ;;  %v367_v58 = vmul.f32 0.5, %v333_v48 }
 0x157   :  { %v1001_v57 = vpop.eup %1000  ;;  %v457_v59 = vadd.f32 1.0, %v999_v51  ;;  %v400_v55 = vmul.f32 0.70710677, %v335_v50  ;;  %v368_v17 = vmul.f32 0.5, %v335_v50 }
 0x158   :  { %v458_v60 = vadd.f32 1.0, %v1001_v57  ;;  %1010 = verf.f32 %v399_v54  ;;  %723 = vmatprep.mubr.f32.mxu1 %v488_v56 }
 0x159   :  { %1012 = verf.f32 %v400_v55  ;;  %724 = vmatmul.mubr.f32.gmra.mrb[22].mxu1 %v487_v61  ;;  %v489_v0 = vmul.f32 %v457_v59, %v361_v37 }
 0x15a   :  { %v1003_v35 = vpop.eup %1002  ;;  %v490_v62 = vmul.f32 %v458_v60, %v362_v53 }
 0x15b   :  { %v1005_v38 = vpop.eup %1004  ;;  %v459_v63 = vadd.f32 1.0, %v1003_v35 }
 0x15c   :  { %v460_v2 = vadd.f32 1.0, %v1005_v38  ;;  %729 = vmatprep.mubr.f32.mxu1 %v490_v62 }
 0x15d   :  { %730 = vmatmul.mubr.f32.gmra.mrb[24].mxu1 %v489_v0  ;;  %v491_v6 = vmul.f32 %v459_v63, %v363_v5 }
 0x15e   :  { %v1007_v7 = vpop.eup %1006  ;;  %v492_v4 = vmul.f32 %v460_v2, %v364_v1 }
 0x15f   :  { %v1009_v9 = vpop.eup %1008  ;;  %v461_v10 = vadd.f32 1.0, %v1007_v7 }
 0x160   :  { %v462_v52 = vadd.f32 1.0, %v1009_v9  ;;  %735 = vmatprep.mubr.f32.mxu1 %v492_v4 }
 0x161   :  { %736 = vmatmul.mubr.f32.gmra.mrb[26].mxu1 %v491_v6  ;;  %v493_v16 = vmul.f32 %v461_v10, %v365_v8 }
 0x162   :  { %v1011_v12 = vpop.eup %1010  ;;  %v494_v13 = vmul.f32 %v462_v52, %v366_v11 }
 0x163   :  { %v1013_v14 = vpop.eup %1012  ;;  %v463_v15 = vadd.f32 1.0, %v1011_v12 }
 0x164   :  { %v464_v18 = vadd.f32 1.0, %v1013_v14  ;;  %741 = vmatprep.mubr.f32.mxu1 %v494_v13 }
 0x165   :  { %742 = vmatmul.mubr.f32.gmra.mrb[28].mxu1 %v493_v16  ;;  %v495_v23 = vmul.f32 %v463_v15, %v367_v58 }
 0x166   :  { %v496_v21 = vmul.f32 %v464_v18, %v368_v17 }
 0x168   :  { %747 = vmatprep.mubr.f32.mxu1 %v496_v21 }
 0x169   :  { %748 = vmatmul.mubr.f32.gmra.mrb[30].mxu1 %v495_v23 }
 0x200   :  { %v659_v22 = vpop.f32.mrb[0].mxu1 }
 0x201   :  { %v754_v26 = vadd.f32 %v659_v22, %v1656_v25  ;;  %v661_v27 = vpop.f32.mrb[1].mxu1 }
 0x202   :  { %v755_v28 = vadd.f32 %v661_v27, %v1660_v20 }
 0x203   :  { %786 = vst [vmem:[%s1795_s5] sm:$0xff] %v754_v26 }
 0x204   :  { %787 = vst [vmem:[%s1795_s5 + $0x8] sm:$0xff] %v755_v28  ;;  %v665_v34 = vpop.f32.mrb[2].mxu1 }
 0x205   :  { %v756_v29 = vadd.f32 %v665_v34, %v1656_v25  ;;  %v667_v33 = vpop.f32.mrb[3].mxu1 }
 0x206   :  { %v757_v36 = vadd.f32 %v667_v33, %v1660_v20 }
 0x207   :  { %788 = vst [vmem:[%s1795_s5 + $0x10] sm:$0xff] %v756_v29 }
 0x208   :  { %789 = vst [vmem:[%s1795_s5 + $0x18] sm:$0xff] %v757_v36  ;;  %v671_v3 = vpop.f32.mrb[4].mxu1 }
 0x209   :  { %v758_v30 = vadd.f32 %v671_v3, %v1656_v25  ;;  %v673_v31 = vpop.f32.mrb[5].mxu1 }
 0x20a   :  { %v759_v32 = vadd.f32 %v673_v31, %v1660_v20 }
 0x20b   :  { %790 = vst [vmem:[%s1795_s5 + $0x20] sm:$0xff] %v758_v30 }
 0x20c   :  { %791 = vst [vmem:[%s1795_s5 + $0x28] sm:$0xff] %v759_v32  ;;  %v677_v40 = vpop.f32.mrb[6].mxu1 }
 0x20d   :  { %v760_v42 = vadd.f32 %v677_v40, %v1656_v25  ;;  %v679_v43 = vpop.f32.mrb[7].mxu1 }
 0x20e   :  { %v761_v44 = vadd.f32 %v679_v43, %v1660_v20 }
 0x20f   :  { %792 = vst [vmem:[%s1795_s5 + $0x30] sm:$0xff] %v760_v42 }
 0x210   :  { %793 = vst [vmem:[%s1795_s5 + $0x38] sm:$0xff] %v761_v44  ;;  %v683_v41 = vpop.f32.mrb[8].mxu1 }
 0x211   :  { %v762_v45 = vadd.f32 %v683_v41, %v1656_v25  ;;  %v685_v39 = vpop.f32.mrb[9].mxu1 }
 0x212   :  { %v763_v46 = vadd.f32 %v685_v39, %v1660_v20 }
 0x213   :  { %794 = vst [vmem:[%s1795_s5 + $0x40] sm:$0xff] %v762_v45 }
 0x214   :  { %795 = vst [vmem:[%s1795_s5 + $0x48] sm:$0xff] %v763_v46  ;;  %v689_v47 = vpop.f32.mrb[10].mxu1 }
 0x215   :  { %v764_v48 = vadd.f32 %v689_v47, %v1656_v25  ;;  %v691_v49 = vpop.f32.mrb[11].mxu1 }
 0x216   :  { %v765_v19 = vadd.f32 %v691_v49, %v1660_v20 }
 0x217   :  { %796 = vst [vmem:[%s1795_s5 + $0x50] sm:$0xff] %v764_v48 }
 0x218   :  { %797 = vst [vmem:[%s1795_s5 + $0x58] sm:$0xff] %v765_v19  ;;  %v695_v50 = vpop.f32.mrb[12].mxu1 }
 0x219   :  { %v766_v51 = vadd.f32 %v695_v50, %v1656_v25  ;;  %v697_v54 = vpop.f32.mrb[13].mxu1 }
 0x21a   :  { %v767_v56 = vadd.f32 %v697_v54, %v1660_v20 }
 0x21b   :  { %798 = vst [vmem:[%s1795_s5 + $0x60] sm:$0xff] %v766_v51 }
 0x21c   :  { %799 = vst [vmem:[%s1795_s5 + $0x68] sm:$0xff] %v767_v56  ;;  %v701_v57 = vpop.f32.mrb[14].mxu1 }
 0x21d   :  { %v768_v59 = vadd.f32 %v701_v57, %v1656_v25  ;;  %v703_v55 = vpop.f32.mrb[15].mxu1 }
 0x21e   :  { %v769_v61 = vadd.f32 %v703_v55, %v1660_v20 }
 0x21f   :  { %800 = vst [vmem:[%s1795_s5 + $0x70] sm:$0xff] %v768_v59 }
 0x220   :  { %801 = vst [vmem:[%s1795_s5 + $0x78] sm:$0xff] %v769_v61  ;;  %v707_v53 = vpop.f32.mrb[16].mxu1 }
 0x221   :  { %v770_v60 = vadd.f32 %v707_v53, %v1656_v25  ;;  %v709_v37 = vpop.f32.mrb[17].mxu1 }
 0x222   :  { %v771_v35 = vadd.f32 %v709_v37, %v1660_v20 }
 0x223   :  { %802 = vst [vmem:[%s1795_s5 + $0x80] sm:$0xff] %v770_v60 }
 0x224   :  { %803 = vst [vmem:[%s1795_s5 + $0x88] sm:$0xff] %v771_v35  ;;  %v713_v62 = vpop.f32.mrb[18].mxu1 }
 0x225   :  { %v772_v38 = vadd.f32 %v713_v62, %v1656_v25  ;;  %v715_v63 = vpop.f32.mrb[19].mxu1 }
 0x226   :  { %v773_v0 = vadd.f32 %v715_v63, %v1660_v20 }
 0x227   :  { %804 = vst [vmem:[%s1795_s5 + $0x90] sm:$0xff] %v772_v38 }
 0x228   :  { %805 = vst [vmem:[%s1795_s5 + $0x98] sm:$0xff] %v773_v0  ;;  %v719_v1 = vpop.f32.mrb[20].mxu1 }
 0x229   :  { %v774_v2 = vadd.f32 %v719_v1, %v1656_v25  ;;  %v721_v5 = vpop.f32.mrb[21].mxu1 }
 0x22a   :  { %v775_v7 = vadd.f32 %v721_v5, %v1660_v20 }
 0x22b   :  { %806 = vst [vmem:[%s1795_s5 + $0xa0] sm:$0xff] %v774_v2 }
 0x22c   :  { %807 = vst [vmem:[%s1795_s5 + $0xa8] sm:$0xff] %v775_v7  ;;  %v725_v4 = vpop.f32.mrb[22].mxu1 }
 0x22d   :  { %v776_v9 = vadd.f32 %v725_v4, %v1656_v25  ;;  %v727_v10 = vpop.f32.mrb[23].mxu1 }
 0x22e   :  { %v777_v6 = vadd.f32 %v727_v10, %v1660_v20 }
 0x22f   :  { %808 = vst [vmem:[%s1795_s5 + $0xb0] sm:$0xff] %v776_v9 }
 0x230   :  { %809 = vst [vmem:[%s1795_s5 + $0xb8] sm:$0xff] %v777_v6  ;;  %v731_v11 = vpop.f32.mrb[24].mxu1 }
 0x231   :  { %v778_v52 = vadd.f32 %v731_v11, %v1656_v25  ;;  %v733_v8 = vpop.f32.mrb[25].mxu1 }
 0x232   :  { %v779_v12 = vadd.f32 %v733_v8, %v1660_v20 }
 0x233   :  { %810 = vst [vmem:[%s1795_s5 + $0xc0] sm:$0xff] %v778_v52 }
 0x234   :  { %811 = vst [vmem:[%s1795_s5 + $0xc8] sm:$0xff] %v779_v12  ;;  %v737_v13 = vpop.f32.mrb[26].mxu1 }
 0x235   :  { %v780_v14 = vadd.f32 %v737_v13, %v1656_v25  ;;  %v739_v15 = vpop.f32.mrb[27].mxu1 }
 0x236   :  { %v781_v16 = vadd.f32 %v739_v15, %v1660_v20 }
 0x237   :  { %812 = vst [vmem:[%s1795_s5 + $0xd0] sm:$0xff] %v780_v14 }
 0x238   :  { %813 = vst [vmem:[%s1795_s5 + $0xd8] sm:$0xff] %v781_v16  ;;  %v743_v17 = vpop.f32.mrb[28].mxu1 }
 0x239   :  { %v782_v18 = vadd.f32 %v743_v17, %v1656_v25  ;;  %v745_v58 = vpop.f32.mrb[29].mxu1 }
 0x23a   :  { %v783_v21 = vadd.f32 %v745_v58, %v1660_v20 }
 0x23b   :  { %814 = vst [vmem:[%s1795_s5 + $0xe0] sm:$0xff] %v782_v18 }
 0x23c   :  { %815 = vst [vmem:[%s1795_s5 + $0xe8] sm:$0xff] %v783_v21  ;;  %v749_v23 = vpop.f32.mrb[30].mxu1 }
 0x23d   :  { %v784_v24 = vadd.f32 %v749_v23, %v1656_v25  ;;  %v751_v22 = vpop.f32.mrb[31].mxu1 }
 0x23e   :  { %v785_v26 = vadd.f32 %v751_v22, %v1660_v20 }
 0x23f   :  { %816 = vst [vmem:[%s1795_s5 + $0xf0] sm:$0xff] %v784_v24 }
 0x240   :  { %817 = vst [vmem:[%s1795_s5 + $0xf8] sm:$0xff] %v785_v26 }

</bundles_post_ra>
